<compile_context>
chip_gen: v5e
topology: v5e:2x2
jax: 0.10.0
libtpu: 0.0.40
codegen_flags: <defaults>
</compile_context>

<pallas_src>
import numpy as np
import jax
import jax.numpy as jnp
from jax.experimental import pallas as pl
from jax.experimental.pallas import tpu as pltpu

BN_EPS = 1e-5


# ----------------------------------------------------------------------------
# Kernel: one (B, tn) column-block of the fused MLPBlock.
#   grid = (j over output-feature tiles [parallel], k over K tiles [arbitrary])
# ----------------------------------------------------------------------------
def _mlp_block_kernel(x_ref, w_ref, b_ref, g_ref, be_ref, o_ref, acc_ref):
    k = pl.program_id(1)

    @pl.when(k == 0)
    def _():
        acc_ref[...] = jnp.zeros_like(acc_ref)

    # Partial Linear: accumulate x[:, k_tile] @ W[k_tile, n_tile] in f32.
    acc_ref[...] += jnp.dot(
        x_ref[...], w_ref[...], preferred_element_type=jnp.float32
    )

    # Epilogue at the last K step: bias, ReLU, BatchNorm(train), residual.
    @pl.when(k == pl.num_programs(1) - 1)
    def _():
        x1 = acc_ref[...] + b_ref[...]
        x2 = jnp.maximum(x1, 0.0)
        mean = jnp.mean(x2, axis=0, keepdims=True)
        var = jnp.mean(jnp.square(x2 - mean), axis=0, keepdims=True)  # biased
        x2n = (x2 - mean) * jax.lax.rsqrt(var + BN_EPS) * g_ref[...] + be_ref[...]
        o_ref[...] = (x2n + x1).astype(o_ref.dtype)


def _pick_tile(dim, pref=128):
    # 128-aligned tile when possible, otherwise a full-extent block (always legal).
    return pref if (dim % pref == 0 and dim > 0) else dim


def mlp_block(x, w, b, gamma, beta, *, tn=None, tk=None):
    """Fused MLPBlock forward: relu(x@W+b) -> BN(train) -> + (x@W+b)."""
    B, K = x.shape
    Kw, N = w.shape
    assert K == Kw
    tn = _pick_tile(N) if tn is None else tn
    tk = _pick_tile(K) if tk is None else tk
    grid = (N // tn, K // tk)

    b2 = b.reshape(1, N).astype(jnp.float32)
    g2 = gamma.reshape(1, N).astype(jnp.float32)
    be2 = beta.reshape(1, N).astype(jnp.float32)

    cost = pl.CostEstimate(
        flops=int(2 * B * K * N + 10 * B * N),
        transcendentals=int(N),  # one rsqrt per output feature
        bytes_accessed=int(4 * (B * K + K * N + 3 * N + B * N)),
    )

    return pl.pallas_call(
        _mlp_block_kernel,
        grid=grid,
        in_specs=[
            pl.BlockSpec((B, tk), lambda j, k: (0, k)),    # x: rows resident, K tiled
            pl.BlockSpec((tk, tn), lambda j, k: (k, j)),   # W tile
            pl.BlockSpec((1, tn), lambda j, k: (0, j)),    # bias
            pl.BlockSpec((1, tn), lambda j, k: (0, j)),    # BN gamma
            pl.BlockSpec((1, tn), lambda j, k: (0, j)),    # BN beta
        ],
        out_specs=pl.BlockSpec((B, tn), lambda j, k: (0, j)),
        out_shape=jax.ShapeDtypeStruct((B, N), x.dtype),
        scratch_shapes=[pltpu.VMEM((B, tn), jnp.float32)],  # f32 accumulator
        compiler_params=pltpu.CompilerParams(
            dimension_semantics=("parallel", "arbitrary"),
            vmem_limit_bytes=64 * 1024 * 1024,
        ),
        cost_estimate=cost,
    )(x, w, b2, g2, be2)


# ----------------------------------------------------------------------------
# Pure-JAX reference (for correctness check)
# ----------------------------------------------------------------------------
def mlp_block_ref(x, w, b, gamma, beta):
    x1 = jnp.dot(x, w, precision=jax.lax.Precision.HIGHEST) + b.reshape(1, -1)
    x2 = jnp.maximum(x1, 0.0)
    mean = jnp.mean(x2, axis=0, keepdims=True)
    var = jnp.mean((x2 - mean) ** 2, axis=0, keepdims=True)
    x2n = (x2 - mean) / jnp.sqrt(var + BN_EPS) * gamma.reshape(1, -1) + beta.reshape(1, -1)
    return x2n + x1


# ----------------------------------------------------------------------------
if __name__ == "__main__":
    key = jax.random.PRNGKey(0)
    kx, kw, kb, kg, kbe = jax.random.split(key, 5)

    # Small shapes consistent with the module: (batch, inp_dim) -> (batch, out_dim)
    B, K, N = 16, 256, 256

    x = jax.random.normal(kx, (B, K), jnp.float32)
    w = jax.random.normal(kw, (K, N), jnp.float32) / np.sqrt(K)
    b = 0.1 * jax.random.normal(kb, (N,), jnp.float32)
    gamma = 1.0 + 0.1 * jax.random.normal(kg, (N,), jnp.float32)
    beta = 0.1 * jax.random.normal(kbe, (N,), jnp.float32)

    out = jax.block_until_ready(mlp_block(x, w, b, gamma, beta))
    ref = jax.block_until_ready(mlp_block_ref(x, w, b, gamma, beta))

    assert out.shape == (B, N)
    assert bool(jnp.all(jnp.isfinite(out)))
    max_err = float(jnp.max(jnp.abs(out - ref)))
    assert max_err < 5e-3, f"max abs error {max_err}"

    print("KERNEL_OK")
</pallas_src>

<mosaic_0001>
module attributes {stable_mosaic.version = 11 : i64} {
  func.func @_mlp_block_kernel(%arg0: i32, %arg1: i32, %arg2: memref<16x128xf32, #tpu.memory_space<vmem>>, %arg3: memref<128x128xf32, #tpu.memory_space<vmem>>, %arg4: memref<1x128xf32, #tpu.memory_space<vmem>>, %arg5: memref<1x128xf32, #tpu.memory_space<vmem>>, %arg6: memref<1x128xf32, #tpu.memory_space<vmem>>, %arg7: memref<16x128xf32, #tpu.memory_space<vmem>>, %arg8: memref<16x128xf32, #tpu.memory_space<vmem>>) attributes {dimension_semantics = [#tpu.dimension_semantics<parallel>, #tpu.dimension_semantics<arbitrary>], iteration_bounds = array<i64: 2, 2>, scalar_prefetch = 0 : i64, scratch_operands = 1 : i64, tpu.core_type = #tpu.core_type<tc>, window_params = [{transform_indices = @transform_0, window_bounds = array<i64: 16, 128>}, {transform_indices = @transform_1, window_bounds = array<i64: 128, 128>}, {transform_indices = @transform_2, window_bounds = array<i64: 1, 128>}, {transform_indices = @transform_3, window_bounds = array<i64: 1, 128>}, {transform_indices = @transform_4, window_bounds = array<i64: 1, 128>}, {transform_indices = @transform_5, window_bounds = array<i64: 16, 128>}]} {
    %c0_i32 = arith.constant 0 : i32
    %0 = arith.cmpi eq, %arg1, %c0_i32 : i32
    %1 = arith.extui %0 : i1 to i32
    %c0_i32_0 = arith.constant 0 : i32
    %2 = arith.cmpi ne, %1, %c0_i32_0 : i32
    scf.if %2 {
      %cst_9 = arith.constant 0.000000e+00 : f32
      %12 = vector.broadcast %cst_9 : f32 to vector<16x128xf32>
      %c0_10 = arith.constant 0 : index
      %c0_11 = arith.constant 0 : index
      %13 = vector.load %arg8[%c0_10, %c0_11] : memref<16x128xf32, #tpu.memory_space<vmem>>, vector<16x128xf32>
      tpu.vector_store %arg8[%c0_10, %c0_11], %12 {strides = array<i32>} : memref<16x128xf32, #tpu.memory_space<vmem>>, vector<16x128xf32>,
    } else {
    }
    %c0 = arith.constant 0 : index
    %c0_1 = arith.constant 0 : index
    %3 = vector.load %arg8[%c0, %c0_1] : memref<16x128xf32, #tpu.memory_space<vmem>>, vector<16x128xf32>
    %c0_2 = arith.constant 0 : index
    %c0_3 = arith.constant 0 : index
    %4 = vector.load %arg2[%c0_2, %c0_3] : memref<16x128xf32, #tpu.memory_space<vmem>>, vector<16x128xf32>
    %c0_4 = arith.constant 0 : index
    %c0_5 = arith.constant 0 : index
    %5 = vector.load %arg3[%c0_4, %c0_5] : memref<128x128xf32, #tpu.memory_space<vmem>>, vector<128x128xf32>
    %cst = arith.constant dense<0.000000e+00> : vector<16x128xf32>
    %6 = tpu.matmul %4, %5, %cst {dimension_numbers = #tpu.dot_dimension_numbers<[1], [0], [0], [1], [0, 0, 1, 1], [], []>} : vector<16x128xf32>, vector<128x128xf32>, vector<16x128xf32> -> vector<16x128xf32>
    %7 = arith.addf %3, %6 : vector<16x128xf32>
    %c0_6 = arith.constant 0 : index
    %c0_7 = arith.constant 0 : index
    %8 = vector.load %arg8[%c0_6, %c0_7] : memref<16x128xf32, #tpu.memory_space<vmem>>, vector<16x128xf32>
    tpu.vector_store %arg8[%c0_6, %c0_7], %7 {strides = array<i32>} : memref<16x128xf32, #tpu.memory_space<vmem>>, vector<16x128xf32>,
    %c1_i32 = arith.constant 1 : i32
    %9 = arith.cmpi eq, %arg1, %c1_i32 : i32
    %10 = arith.extui %9 : i1 to i32
    %c0_i32_8 = arith.constant 0 : i32
    %11 = arith.cmpi ne, %10, %c0_i32_8 : i32
    scf.if %11 {
      %c0_9 = arith.constant 0 : index
      %c0_10 = arith.constant 0 : index
      %12 = vector.load %arg8[%c0_9, %c0_10] : memref<16x128xf32, #tpu.memory_space<vmem>>, vector<16x128xf32>
      %c0_11 = arith.constant 0 : index
      %c0_12 = arith.constant 0 : index
      %13 = vector.load %arg4[%c0_11, %c0_12] : memref<1x128xf32, #tpu.memory_space<vmem>>, vector<1x128xf32>
      %14 = vector.broadcast %13 : vector<1x128xf32> to vector<16x128xf32>
      %15 = arith.addf %12, %14 : vector<16x128xf32>
      %cst_13 = arith.constant 0.000000e+00 : f32
      %16 = vector.broadcast %cst_13 : f32 to vector<16x128xf32>
      %17 = arith.maximumf %15, %16 : vector<16x128xf32>
      %cst_14 = arith.constant dense<0.000000e+00> : vector<128xf32>
      %18 = vector.multi_reduction <add>, %17, %cst_14 [0] : vector<16x128xf32> to vector<128xf32>
      %19 = vector.shape_cast %18 : vector<128xf32> to vector<1x128xf32>
      %cst_15 = arith.constant 1.600000e+01 : f32
      %20 = vector.broadcast %cst_15 : f32 to vector<1x128xf32>
      %21 = arith.divf %19, %20 : vector<1x128xf32>
      %22 = vector.broadcast %21 : vector<1x128xf32> to vector<16x128xf32>
      %23 = arith.subf %17, %22 : vector<16x128xf32>
      %24 = arith.mulf %23, %23 : vector<16x128xf32>
      %cst_16 = arith.constant dense<0.000000e+00> : vector<128xf32>
      %25 = vector.multi_reduction <add>, %24, %cst_16 [0] : vector<16x128xf32> to vector<128xf32>
      %26 = vector.shape_cast %25 : vector<128xf32> to vector<1x128xf32>
      %cst_17 = arith.constant 1.600000e+01 : f32
      %27 = vector.broadcast %cst_17 : f32 to vector<1x128xf32>
      %28 = arith.divf %26, %27 : vector<1x128xf32>
      %29 = vector.broadcast %21 : vector<1x128xf32> to vector<16x128xf32>
      %30 = arith.subf %17, %29 : vector<16x128xf32>
      %cst_18 = arith.constant 9.99999974E-6 : f32
      %31 = vector.broadcast %cst_18 : f32 to vector<1x128xf32>
      %32 = arith.addf %28, %31 : vector<1x128xf32>
      %33 = math.rsqrt %32 : vector<1x128xf32>
      %34 = vector.broadcast %33 : vector<1x128xf32> to vector<16x128xf32>
      %35 = arith.mulf %30, %34 : vector<16x128xf32>
      %c0_19 = arith.constant 0 : index
      %c0_20 = arith.constant 0 : index
      %36 = vector.load %arg5[%c0_19, %c0_20] : memref<1x128xf32, #tpu.memory_space<vmem>>, vector<1x128xf32>
      %37 = vector.broadcast %36 : vector<1x128xf32> to vector<16x128xf32>
      %38 = arith.mulf %35, %37 : vector<16x128xf32>
      %c0_21 = arith.constant 0 : index
      %c0_22 = arith.constant 0 : index
      %39 = vector.load %arg6[%c0_21, %c0_22] : memref<1x128xf32, #tpu.memory_space<vmem>>, vector<1x128xf32>
      %40 = vector.broadcast %39 : vector<1x128xf32> to vector<16x128xf32>
      %41 = arith.addf %38, %40 : vector<16x128xf32>
      %42 = arith.addf %41, %15 : vector<16x128xf32>
      %c0_23 = arith.constant 0 : index
      %c0_24 = arith.constant 0 : index
      %43 = vector.load %arg7[%c0_23, %c0_24] : memref<16x128xf32, #tpu.memory_space<vmem>>, vector<16x128xf32>
      tpu.vector_store %arg7[%c0_23, %c0_24], %42 {strides = array<i32>} : memref<16x128xf32, #tpu.memory_space<vmem>>, vector<16x128xf32>,
    } else {
    }
    return
  }
  func.func @transform_0(%arg0: i32, %arg1: i32) -> (i32, i32) {
    %c0_i32 = arith.constant 0 : i32
    %c0_i32_0 = arith.constant 0 : i32
    return %c0_i32, %arg1 : i32, i32
  }
  func.func @transform_1(%arg0: i32, %arg1: i32) -> (i32, i32) {
    %c0_i32 = arith.constant 0 : i32
    return %arg1, %arg0 : i32, i32
  }
  func.func @transform_2(%arg0: i32, %arg1: i32) -> (i32, i32) {
    %c0_i32 = arith.constant 0 : i32
    %c0_i32_0 = arith.constant 0 : i32
    return %c0_i32, %arg0 : i32, i32
  }
  func.func @transform_3(%arg0: i32, %arg1: i32) -> (i32, i32) {
    %c0_i32 = arith.constant 0 : i32
    %c0_i32_0 = arith.constant 0 : i32
    return %c0_i32, %arg0 : i32, i32
  }
  func.func @transform_4(%arg0: i32, %arg1: i32) -> (i32, i32) {
    %c0_i32 = arith.constant 0 : i32
    %c0_i32_0 = arith.constant 0 : i32
    return %c0_i32, %arg0 : i32, i32
  }
  func.func @transform_5(%arg0: i32, %arg1: i32) -> (i32, i32) {
    %c0_i32 = arith.constant 0 : i32
    %c0_i32_0 = arith.constant 0 : i32
    return %c0_i32, %arg0 : i32, i32
  }
}

</mosaic_0001>

<bundles_post_ra>
// kernel: tpu_custom_call.1
= control target key start
LH: loop header
LB: loop body
LE: loop exit
PB: predicated region body
PF: predicated region fallthrough
CT: control target
= control target key end

     0   :  { %s1528_s0 = inlined_call_operand.hbm [shape: f32[16,256], index: 0, kind: input, shape index: {}]   ;;  %s1529_s1 = inlined_call_operand.hbm [shape: f32[256,256], index: 1, kind: input, shape index: {}]   ;;  %s1530_s2 = inlined_call_operand.hbm [shape: f32[1,256], index: 2, kind: input, shape index: {}]   ;;  %s1531_s3 = inlined_call_operand.vmem [shape: f32[1,256], index: 3, kind: input, shape index: {}]   ;;  %s1532_s4 = inlined_call_operand.hbm [shape: f32[1,256], index: 4, kind: input, shape index: {}]   ;;  %s1533_s5 = inlined_call_operand.hbm [shape: f32[16,256], index: 5, kind: output, shape index: {}]  }
   0x1   :  { %1542 = sst [smem:[#allocation27_spill]] %s1528_s0 }
   0x2   :  { %1543 = sst [smem:[#allocation28_spill]] %s1529_s1 }
   0x3   :  { %1544 = sst [smem:[#allocation29_spill]] %s1531_s3 }
   0x4   :  { %1545 = sst [smem:[#allocation30_spill]] %s1532_s4 }
   0x5   :  { %1546 = sst [smem:[#allocation31_spill]] %s1533_s5 }
   0x6   :  { %10 = vsyncpa [#allocation4], 0 }
   0x7   :  { %12 = vsyncpa [#allocation4 + $0x1], 0 }
   0x8   :  { %13 = vsyncpa [#allocation7], 0 }
   0x9   :  { %15 = vsyncpa [#allocation7 + $0x1], 0 }
   0xa   :  { %16 = vsyncpa [#allocation10], 0 }
   0xb   :  { %18 = vsyncpa [#allocation10 + $0x1], 0 }
   0xc   :  { %19 = vsyncpa [#allocation5], 0 }
   0xd   :  { %21 = vsyncpa [#allocation5 + $0x1], 0  ;;  %s1186_s18 = smov 0   ;;  %s1188_s19 = smov 0  }
   0xe   :  { %s1190_s20 = smov 0   ;;  %s1192_s21 = smov 0  }
   0xf   :  { %s1194_s22 = smov 0   ;;  %s1196_s23 = smov 0  }
  0x10   :  { %s1198_s24 = smov 0   ;;  %s1200_s25 = smov 0  }
  0x11   :  { %s1202_s26 = smov 0   ;;  %s1204_s27 = smov 0  }
  0x12   :  { %s1206_s28 = smov 0   ;;  %s1208_s29 = smov 0  }
  0x13   :  { %s1210_s30 = smov 0   ;;  %s1212_s6 = smov 0  }
  0x14 LB: > { %1547 = sst [smem:[#allocation17_spill]] %s1114_s23  ;;  %s36_s7 = sadd.s32 1, %s1138_s29  ;;  %s1146_s6 = sphi %s1212_s6, %s27_s6   ;;  %s1142_s30 = sphi %s1210_s30, %s1595_s30   ;;  %s1138_s29 = sphi %s1208_s29, %s1594_s29   ;;  %s1134_s28 = sphi %s1206_s28, %s1593_s28   ;;  %s1130_s27 = sphi %s1204_s27, %s1581_s27   ;;  %s1126_s26 = sphi %s1202_s26, %s1592_s26   ;;  %s1122_s25 = sphi %s1200_s25, %s1591_s25   ;;  %s1118_s24 = sphi %s1198_s24, %s1590_s24   ;;  %s1114_s23 = sphi %s1196_s23, %s1589_s23   ;;  %s1110_s22 = sphi %s1194_s22, %s1588_s22   ;;  %s1106_s21 = sphi %s1192_s21, %s1587_s21   ;;  %s1102_s20 = sphi %s1190_s20, %s1586_s20   ;;  %s1098_s19 = sphi %s1188_s19, %s1585_s19   ;;  %s1094_s18 = sphi %s1186_s18, %s1584_s18  }
  0x15   : > { %1548 = sst [smem:[#allocation18_spill]] %s1126_s26  ;;  %s39_s8 = sadd.s32 1, %s1142_s30 }
  0x16   : > { %1549 = sst [smem:[#allocation19_spill]] %s1130_s27  ;;  %p37_p0 = scmp.ge.s32.totalorder %s36_s7, 2 }
  0x17   : > { %1550 = sst [smem:[#allocation20_spill]] %s1134_s28  ;;  %p54_p1 = scmp.eq.s32.totalorder %s1146_s6, 0 }
  0x18   : > { %1551 = sst [smem:[#allocation21_spill]] %s1138_s29  ;;  %s74_s9 = sadd.s32 1, %s1114_s23 }
  0x19   : > { %p81_p2 = scmp.ne.s32.totalorder %s1114_s23, %s1110_s22  ;;  %s1597_s7 = smov (%p37_p0, %s36_s7), 0 }
  0x1a   : > { %1552 = sst [smem:[#allocation22_spill]] %s1597_s7  ;;  %s1599_s8 = smov (!%p37_p0, %s39_s8), %s1142_s30 }
  0x1b   : > { %s1267_s10 = ssub.s32 %s1138_s29, %s1597_s7  ;;  %p1271_p3 = por %p81_p2, %p54_p1 }
  0x1c   : > { %p41_p4 = scmp.ge.s32.totalorder %s1599_s8, 2  ;;  %p44_p5 = scmp.eq.s32.totalorder %s1267_s10, 0 }
  0x1d   : > { %p87_p6 = scmp.ne.s32.totalorder %s1110_s22, %s1106_s21  ;;  %p1539_p7 = scmp.lt.s32.totalorder %s1146_s6, 4 }
  0x1e   : > { %s1601_s8 = smov (%p41_p4, %s1599_s8), 0  ;;  %s236_s14 = sand.u32 1, %s1146_s6  }
  0x1f   : > { %1554 = sst [smem:[#allocation23_spill]] %s1601_s8  ;;  %s1283_s12 = ssub.s32 %s1142_s30, %s1601_s8 }
  0x20   : > { %s71_s13 = sor.u32 %s1283_s12, %s1267_s10  ;;  %s238_s15 = sand.u32 1, %s1114_s23  }
  0x21   : > { %p72_p8 = scmp.eq.s32.totalorder %s71_s13, 0  ;;  %s681_s17 = sshll.u32 %s238_s15, 7 }
  0x22   : > { %s695_s7 = sshll.u32 %s1138_s29, 5  ;;  %s240_s3 = scalar_lea.vmem [#allocation6], %s681_s17 }
  0x23   : > { %s1290_s16 = scalar_select %p72_p8, %s1114_s23, %s74_s9  }
  0x24   : > { %s245_s5 = sadd.s32 %s1142_s30, %s695_s7  ;;  %s250_s28 = sshll.u32 %s240_s3, 4  ;;  %s251_s28 = int_to_ptr.vmem [resolvable:$true] %s250_s28 }
  0x25   : > { %1555 = sst [smem:[#allocation24_spill]] %s1290_s16  ;;  %s684_s27 = sshll.u32 %s245_s5, 3 }
  0x26   : > { %s1556_s1 = sld [smem:[#allocation28_spill]]  ;;  %p726_p9 = pnand %p1539_p7, %p1271_p3 }
  0x27   : > { %p685_p10 = scmp.ge.s32.totalorder %s1146_s6, 1  ;;  %p298_p11 = scmp.lt.s32.totalorder %s1146_s6, 5 }
  0x28   : > { %s1303_s3 = scalar_lea.sflag [#allocation7], %s236_s14  ;;  %s1148_s4 = smov 256  }
  0x29   : > { %s1149_s5 = smov 128   ;;  %s1150_s7 = smov 8  }
  0x2a   : > { %p1306_p12 = pnand %p685_p10, %p298_p11  ;;  %s46_s8 = sadd.s32 1, %s1126_s26 }
  0x2b   : > { %s1314_s11 = scalar_select %p44_p5, %s1126_s26, %s46_s8  }
  0x2c   : > { %s247_s13 = scalar_lea.hbm %s1556_s1, %s684_s27  ;;  %p53_p13 = scmp.ne.s32.totalorder %s1126_s26, %s1122_s25 }
  0x2d   : > { %s248_s9 = sshll.u32 %s247_s13, 4  ;;  %1558 = sst [smem:[#allocation25_spill]] %s1314_s11  ;;  %s249_s9 = int_to_ptr.hbm [resolvable:$true] %s248_s9 }
  0x2e   : > { %728 = dma.hbm_to_vmem [thread:$0]  (!%p726_p9), %s249_s9, 2048, %s251_s28, %s1303_s3, %s1148_s4, %s1149_s5, %s1150_s7  }
  0x2f   : > { %p59_p0 = scmp.ne.s32.totalorder %s1122_s25, %s1118_s24  ;;  %s215_s14 = sand.u32 1, %s1126_s26  }
  0x30   : > { %s680_s15 = sshll.u32 %s1138_s29, 3  ;;  %p55_p2 = por %p54_p1, %p53_p13 }
  0x31   : > { %s679_s28 = sshll.u32 %s215_s14, 4  ;;  %s1559_s0 = sld [smem:[#allocation27_spill]] }
  0x32   : > { %s219_s8 = scalar_lea.vmem [#allocation3], %s679_s28  ;;  %p723_p3 = pnand %p1539_p7, %p55_p2 }
  0x33   : > { %s226_s1 = sshll.u32 %s219_s8, 4  ;;  %s216_s29 = scalar_lea.sflag [#allocation4], %s215_s14  ;;  %s227_s1 = int_to_ptr.vmem [resolvable:$true] %s226_s1 }
  0x34   : > { %s1330_s11 = sadd.s32 4294967295, %s1146_s6   ;;  %p98_p5 = scmp.eq.s32.totalorder %s1283_s12, 0 }
  0x35   : > { %p60_p4 = scmp.eq.s32.totalorder %s1330_s11, 0  ;;  %s100_s17 = sadd.s32 1, %s1102_s20 }
  0x36   : > { %p107_p10 = scmp.ne.s32.totalorder %s1102_s20, %s1098_s19  ;;  %p113_p11 = scmp.ne.s32.totalorder %s1098_s19, %s1094_s18 }
  0x37   : > { %s223_s10 = scalar_lea.hbm %s1559_s0, %s680_s15  ;;  %s676_s15 = sadd.s32 4294967294, %s1146_s6  }
  0x38   : > { %s224_s9 = sshll.u32 %s223_s10, 4  ;;  %p1339_p8 = por %p60_p4, %p59_p0  ;;  %s225_s9 = int_to_ptr.hbm [resolvable:$true] %s224_s9 }
  0x39   : > { %725 = dma.hbm_to_vmem [thread:$0]  (!%p723_p3), %s225_s9, 256, %s227_s1, %s216_s29, %s1148_s4, %s1149_s5, %s1150_s7  }
  0x3a   : > { %p1346_p9 = por %p87_p6, %p60_p4  ;;  %p189_p13 = scmp.eq.s32.totalorder %s1330_s11, 3 }
  0x3b   : > { %s1351_s1 = scalar_select %p98_p5, %s1102_s20, %s100_s17  }
  0x3c   : > { %p195_p2 = scmp.eq.s32.totalorder %s676_s15, 3  ;;  %p109_p3 = por %p107_p10, %p54_p1 }
  0x3d   : > { %1562 = sst [smem:[#allocation26_spill]] %s1351_s1  ;;  %p1360_p0 = por %p113_p11, %p60_p4 }
  0x3e   : > { %p1364_p7 = por %p189_p13, %p107_p10  ;;  %p1368_p6 = por %p195_p2, %p113_p11 }
  0x3f   : > { %s262_s12 = sand.u32 1, %s1102_s20   ;;  %s266_s7 = scalar_lea.hbm %s1530_s2, %s1142_s30 }
  0x40   : > { %s268_s14 = sshll.u32 %s266_s7, 4  ;;  %s263_s10 = scalar_lea.vmem [#allocation8], %s262_s12  ;;  %s269_s14 = int_to_ptr.hbm [resolvable:$true] %s268_s14 }
  0x41   : > { %s270_s9 = sshll.u32 %s263_s10, 4  ;;  %p1566_p1 = scmp.lt.s32.totalorder %s1146_s6, 4  ;;  %s271_s9 = int_to_ptr.vmem [resolvable:$true] %s270_s9 }
  0x42   : > { %s1567_s17 = sld [smem:[#allocation30_spill]]  ;;  %s286_s16 = scalar_lea.vmem [#allocation9], %s262_s12 }
  0x43   : > { %p729_p4 = pnand %p1566_p1, %p109_p3  ;;  %s293_s23 = sshll.u32 %s286_s16, 4  ;;  %s294_s23 = int_to_ptr.vmem [resolvable:$true] %s293_s23 }
  0x44   : > { %s284_s1 = scalar_lea.sflag [#allocation10], %s262_s12  ;;  %s304_s4 = sand.u32 (!%p1306_p12), 1, %s1122_s25  }
  0x45   : > { %731 = dma.hbm_to_vmem [thread:$0]  (!%p729_p4), %s269_s14, 16, %s271_s9, %s1303_s3  }
  0x46   : > { %302 = sbr.rel (%p1306_p12) target bundleno = 365 (0x16d), region = 40  ;;  %s1387_s5 = sshll.u32 (!%p1306_p12), %s304_s4, 4 }
  0x47   : > { %s305_s7 = scalar_lea.sflag (!%p1306_p12), [#allocation4], %s304_s4  ;;  %s308_s10 = scalar_lea.vmem (!%p1306_p12), [#allocation3], %s1387_s5 }
  0x48   : > { %s289_s0 = scalar_lea.hbm %s1567_s17, %s1142_s30 }
  0x49   : > { %s291_s26 = sshll.u32 %s289_s0, 4  ;;  %s292_s26 = int_to_ptr.hbm [resolvable:$true] %s291_s26 }
  0x4a   : > { %734 = dma.hbm_to_vmem [thread:$0]  (!%p729_p4), %s292_s26, 16, %s294_s23, %s284_s1  }
  0x4b   : > { %1073 = dma.done.wait (%p1339_p8), %s305_s7, 256  }
  0x4c   : > { %1075 = vsyncadd (%p1339_p8), %s305_s7, 4294967040  ;;  %s314_s0 = sand.u32 1, %s1330_s11   ;;  %s316_s23 = sand.u32 1, %s1110_s22  }
  0x4d   : > { %s687_s26 = sshll.u32 %s316_s23, 7  ;;  %s315_s16 = scalar_lea.sflag [#allocation7], %s314_s0 }
  0x4e   : > { %s1396_s3 = scalar_lea.vmem [#allocation6], %s687_s26 }
  0x4f   : > { %1077 = dma.done.wait (%p1346_p9), %s315_s16, 2048  }
  0x50   : > { %1079 = vsyncadd (%p1346_p9), %s315_s16, 4294965248  ;;  %s1403_s27 = sand.u32 1, %s1098_s19  }
  0x51   : > { %s327_s28 = scalar_lea.vmem [#allocation8], %s1403_s27 }
  0x52   : > { %1081 = dma.done.wait (%p1360_p0), %s315_s16, 16  }
  0x53   : > { %1083 = vsyncadd (%p1360_p0), %s315_s16, 4294967280  ;;  %s334_s11 = scalar_lea.sflag [#allocation10], %s1403_s27  ;;  %s336_s1 = scalar_lea.vmem [#allocation9], %s1403_s27 }
  0x54   : > { %1085 = dma.done.wait (%p1360_p0), %s334_s11, 16  }
  0x55   : > { %1087 = vsyncadd (%p1360_p0), %s334_s11, 4294967280  ;;  %s1568_s13 = sld [smem:[#allocation20_spill]]  ;;  %s688_s12 = sshll.u32 %s1403_s27, 4 }
  0x56   : > { %s1569_s8 = sld [smem:[#allocation29_spill]]  ;;  %s1425_s17 = scalar_lea.vmem [#allocation11], %s688_s12 }
  0x57   : > { %s1570_s4 = sld [smem:[#allocation19_spill]] }
  0x5b   : > { %p381_p12 = scmp.lt.s32.totalorder %s1568_s13, 1 }
  0x5d   : > { %s1603_s13 = smov (!%p381_p12, %s1568_s13), 1  ;;  %p689_p5 = scmp.ne.s32.totalorder %s1570_s4, 0 }
  0x5e   : > { %s383_s15 = scalar_lea.vmem %s1569_s8, %s1603_s13 }
  0x5f   : > { %387 = sbr.rel (%p689_p5) target bundleno = 103 (0x67), region = 60 }
  0x64   : > { %v1151_v0 = vmov 0.0  }
  0x65   : > { %388 = vst [vmem:[#allocation2] sm:$0xff] %v1151_v0 }
  0x66   : > { %389 = vst [vmem:[#allocation2 + $0x8] sm:$0xff] %v1151_v0 }
  0x67 PF: > { %v409_v1 = vld [vmem:[%s1396_s3 + $0x78] sm:$0xff]  ;;  %v408_v2 = vld [vmem:[%s1396_s3 + $0x70] sm:$0xff]  ;;  %v407_v3 = vld [vmem:[%s1396_s3 + $0x68] sm:$0xff]  ;;  %s1571_s24 = sld [smem:[#allocation19_spill]] }
  0x68   : > { %410 = vmatpush.msra.mxu0 %v409_v1  ;;  %696 = vmatpush.msra.mxu1 %v409_v1  ;;  %v406_v4 = vld [vmem:[%s1396_s3 + $0x60] sm:$0xff]  ;;  %v405_v5 = vld [vmem:[%s1396_s3 + $0x58] sm:$0xff]  ;;  %v404_v6 = vld [vmem:[%s1396_s3 + $0x50] sm:$0xff] }
  0x69   : > { %v403_v7 = vld [vmem:[%s1396_s3 + $0x48] sm:$0xff]  ;;  %v402_v8 = vld [vmem:[%s1396_s3 + $0x40] sm:$0xff]  ;;  %v401_v9 = vld [vmem:[%s1396_s3 + $0x38] sm:$0xff] }
  0x6a   : > { %411 = vmatpush.msra.mxu0 %v408_v2  ;;  %697 = vmatpush.msra.mxu1 %v408_v2  ;;  %v400_v10 = vld [vmem:[%s1396_s3 + $0x30] sm:$0xff]  ;;  %v399_v11 = vld [vmem:[%s1396_s3 + $0x28] sm:$0xff]  ;;  %v398_v12 = vld [vmem:[%s1396_s3 + $0x20] sm:$0xff] }
  0x6b   : > { %v397_v13 = vld [vmem:[%s1396_s3 + $0x18] sm:$0xff]  ;;  %v396_v14 = vld [vmem:[%s1396_s3 + $0x10] sm:$0xff]  ;;  %v395_v15 = vld [vmem:[%s1396_s3 + $0x8] sm:$0xff] }
  0x6c   : > { %412 = vmatpush.msra.mxu0 %v407_v3  ;;  %698 = vmatpush.msra.mxu1 %v407_v3  ;;  %v394_v16 = vld [vmem:[%s1396_s3] sm:$0xff]  ;;  %v393_v18 = vld [vmem:[%s308_s10 + $0x8] sm:$0xff]  ;;  %v390_v19 = vld [vmem:[#allocation2] sm:$0xff] }
  0x6d   : > { %v392_v17 = vld [vmem:[%s308_s10] sm:$0xff]  ;;  %v391_v20 = vld [vmem:[#allocation2 + $0x8] sm:$0xff]  ;;  %p690_p8 = scmp.ne.s32.totalorder %s1571_s24, 1 }
  0x6e   : > { %413 = vmatpush.msra.mxu0 %v406_v4  ;;  %699 = vmatpush.msra.mxu1 %v406_v4 }
  0x70   : > { %414 = vmatpush.msra.mxu0 %v405_v5  ;;  %700 = vmatpush.msra.mxu1 %v405_v5 }
  0x72   : > { %415 = vmatpush.msra.mxu0 %v404_v6  ;;  %701 = vmatpush.msra.mxu1 %v404_v6 }
  0x74   : > { %416 = vmatpush.msra.mxu0 %v403_v7  ;;  %702 = vmatpush.msra.mxu1 %v403_v7 }
  0x76   : > { %417 = vmatpush.msra.mxu0 %v402_v8  ;;  %703 = vmatpush.msra.mxu1 %v402_v8 }
  0x78   : > { %418 = vmatpush.msra.mxu0 %v401_v9  ;;  %704 = vmatpush.msra.mxu1 %v401_v9 }
  0x7a   : > { %419 = vmatpush.msra.mxu0 %v400_v10  ;;  %705 = vmatpush.msra.mxu1 %v400_v10 }
  0x7c   : > { %420 = vmatpush.msra.mxu0 %v399_v11  ;;  %706 = vmatpush.msra.mxu1 %v399_v11 }
  0x7e   : > { %421 = vmatpush.msra.mxu0 %v398_v12  ;;  %707 = vmatpush.msra.mxu1 %v398_v12 }
  0x80   : > { %422 = vmatpush.msra.mxu0 %v397_v13  ;;  %708 = vmatpush.msra.mxu1 %v397_v13 }
  0x82   : > { %423 = vmatpush.msra.mxu0 %v396_v14  ;;  %709 = vmatpush.msra.mxu1 %v396_v14 }
  0x84   : > { %424 = vmatpush.msra.mxu0 %v395_v15  ;;  %710 = vmatpush.msra.mxu1 %v395_v15 }
  0x86   : > { %425 = vmatpush.msra.mxu0 %v394_v16  ;;  %711 = vmatpush.msra.mxu1 %v394_v16 }
  0x87   : > { %426 = vmatmul.f32.vlgmr.msra.gmra.mxu0 %v392_v17  ;;  %429 = vmatmul.f32.vlgmr.msra.gmra.mxu1 %v393_v18 }
 0x104   : > { %v427_v21 = vpop.f32.mrf.mxu0  ;;  %v430_v22 = vpop.f32.mrf.mxu1  ;;  %440 = sbr.rel (%p690_p8) target bundleno = 342 (0x156), region = 64 }
 0x105   : > { %v433_v23 = vadd.f32 %v427_v21, %v390_v19  ;;  %v434_v24 = vadd.f32 %v430_v22, %v391_v20 }
 0x107   : > { %435 = vst [vmem:[#allocation2] sm:$0xff] %v433_v23 }
 0x108   : > { %436 = vst [vmem:[#allocation2 + $0x8] sm:$0xff] %v434_v24 }
 0x109   : > { %v861_v27 = vld [vmem:[%s327_s28] ss:$0 sm:$0xff]  ;;  %v1152_v28 = vmov 16.0  }
 0x10a   : > { %864 = vrcp.f32 %v1152_v28  ;;  %v862_v2 = vld [vmem:[%s383_s15] ss:$0 sm:$0xff] }
 0x10b   : > { %v863_v5 = vld [vmem:[%s336_s1] ss:$0 sm:$0xff] }
 0x10e   : > { %v441_v25 = vld [vmem:[#allocation2] sm:$0xff] }
 0x10f   : > { %v442_v26 = vld [vmem:[#allocation2 + $0x8] sm:$0xff]  ;;  %v447_v29 = vadd.f32 %v861_v27, %v441_v25 }
 0x110   : > { %v448_v30 = vadd.f32 %v861_v27, %v442_v26  ;;  %v865_v33 = vpop.eup %864 }
 0x111   : > { %v449_v31 = vmax.f32 %v447_v29, 0.0  ;;  %v459_v35 = vmul.f32 16.0, %v865_v33  ;;  %vm463_vm0 = vweird.f32 %v865_v33 }
 0x112   : > { %v450_v32 = vmax.f32 %v448_v30, 0.0 }
 0x113   : > { %v460_v37 = vsub.f32 1.0, %v459_v35 }
 0x114   : > { %v451_v34 = vadd.f32 %v450_v32, %v449_v31 }
 0x115   : > { %v461_v39 = vmul.f32 %v865_v33, %v460_v37 }
 0x116   : > { %v452_v36 = vrot.slane %v451_v34, 4 }
 0x117   : > { %v462_v41 = vadd.f32 %v865_v33, %v461_v39 }
 0x118   : > { %v453_v38 = vadd.f32 %v452_v36, %v451_v34 }
 0x119   : > { %v464_v44 = vsel %vm463_vm0, %v865_v33, %v462_v41 }
 0x11a   : > { %v454_v40 = vrot.slane %v453_v38, 2 }
 0x11c   : > { %v455_v42 = vadd.f32 %v454_v40, %v453_v38 }
 0x11e   : > { %v456_v43 = vrot.slane %v455_v42, 1 }
 0x120   : > { %v457_v45 = vadd.f32 %v456_v43, %v455_v42 }
 0x122   : > { %v465_v46 = vmul.f32 %v464_v44, %v457_v45 }
 0x124   : > { %v466_v47 = vsub.f32 %v449_v31, %v465_v46  ;;  %v467_v48 = vsub.f32 %v450_v32, %v465_v46 }
 0x126   : > { %v468_v49 = vmul.f32 %v466_v47, %v466_v47  ;;  %v469_v50 = vmul.f32 %v467_v48, %v467_v48 }
 0x128   : > { %v470_v51 = vadd.f32 %v469_v50, %v468_v49 }
 0x12a   : > { %v471_v52 = vrot.slane %v470_v51, 4 }
 0x12c   : > { %v472_v53 = vadd.f32 %v471_v52, %v470_v51 }
 0x12e   : > { %v473_v54 = vrot.slane %v472_v53, 2 }
 0x130   : > { %v474_v55 = vadd.f32 %v473_v54, %v472_v53 }
 0x132   : > { %v475_v56 = vrot.slane %v474_v55, 1 }
 0x134   : > { %v476_v57 = vadd.f32 %v475_v56, %v474_v55 }
 0x136   : > { %v477_v58 = vmul.f32 %v476_v57, %v464_v44 }
 0x138   : > { %v478_v59 = vadd.f32 1e-05, %v477_v58 }
 0x13a   : > { %866 = vrsqrt.f32 %v478_v59  ;;  %vm485_vm1 = vweird.f32 %v478_v59 }
 0x140   : > { %v867_v60 = vpop.eup %866 }
 0x141   : > { %v480_v61 = vmul.f32 %v867_v60, %v478_v59  ;;  %vm486_vm2 = vweird.f32 %v867_v60 }
 0x142   : > { %vm487_vm3 = vmor %vm485_vm1, %vm486_vm2 }
 0x143   : > { %v481_v62 = vmul.f32 %v867_v60, %v480_v61 }
 0x145   : > { %v482_v63 = vmul.f32 0.5, %v481_v62 }
 0x147   : > { %v483_v0 = vsub.f32 1.5, %v482_v63 }
 0x149   : > { %v484_v1 = vmul.f32 %v867_v60, %v483_v0 }
 0x14b   : > { %v488_v3 = vsel %vm487_vm3, %v867_v60, %v484_v1 }
 0x14c   : > { %v489_v4 = vmul.f32 %v488_v3, %v466_v47  ;;  %v490_v6 = vmul.f32 %v488_v3, %v467_v48 }
 0x14e   : > { %v495_v7 = vmul.f32 %v862_v2, %v489_v4  ;;  %v496_v8 = vmul.f32 %v862_v2, %v490_v6 }
 0x150   : > { %v501_v9 = vadd.f32 %v863_v5, %v495_v7  ;;  %v502_v10 = vadd.f32 %v863_v5, %v496_v8 }
 0x152   : > { %v503_v11 = vadd.f32 %v501_v9, %v447_v29  ;;  %v504_v12 = vadd.f32 %v502_v10, %v448_v30 }
 0x154   : > { %505 = vst [vmem:[%s1425_s17] sm:$0xff] %v503_v11 }
 0x155   : > { %506 = vst [vmem:[%s1425_s17 + $0x8] sm:$0xff] %v504_v12 }
 0x156 PF: > { %s1573_s0 = sld [smem:[#allocation20_spill]]  ;;  %s519_s11 = sshll.u32 %s1425_s17, 4  ;;  %s520_s11 = int_to_ptr.vmem [resolvable:$true] %s519_s11 }
 0x157   : > { %s1574_s3 = sld [smem:[#allocation31_spill]]  ;;  %s508_s13 = scalar_lea.sflag [#allocation5], %s1403_s27 }
 0x15c   : > { %s692_s23 = sshll.u32 %s1573_s0, 3 }
 0x15d   : > { %s518_s28 = scalar_lea.hbm %s1574_s3, %s692_s23  ;;  %s1008_s15 = scalar_lea.hbm %s1574_s3, 32 }
 0x15e   : > { %s521_s1 = sshll.u32 %s518_s28, 4  ;;  %s522_s1 = int_to_ptr.hbm [resolvable:$true] %s521_s1 }
 0x15f   : > { %s1002_s12 = sshra.s32 %s522_s1, 4  ;;  %s1003_s12 = int_to_ptr.hbm [resolvable:$true] %s1002_s12 }
 0x160   : > { %s1004_s14 = scalar_lea.hbm %s1003_s12, 16  ;;  %p1009_p13 = scmp.lt.s32.totalorder %s1003_s12, %s1574_s3 }
 0x161   : > { %p1005_p9 = scmp.ne.s32.totalorder %s1003_s12, %s1004_s14  ;;  %p1010_p2 = scmp.lt.s32.totalorder %s1008_s15, %s1004_s14 }
 0x163   : > { %p1006_p10 = pnand %p1005_p9, %p1364_p7  ;;  %p1011_p3 = por %p1010_p2, %p1009_p13 }
 0x165   : > { %p1007_p11 = pneg %p1006_p10 }
 0x167   : > { %p1012_p0 = pnand %p1011_p3, %p1007_p11 }
 0x169   : > { %1015 = shalt.err (!%p1012_p0)
}
 0x16a   : > { %s1153_s27 = smov 128   ;;  %s1154_s17 = smov 256  }
 0x16b   : > { %s1155_s5 = smov 8  }
 0x16c   : > { %720 = dma.vmem_to_hbm [thread:$0]  (%p1364_p7), %s520_s11, 256, %s522_s1, %s508_s13, %s1153_s27, %s1154_s17, %s1155_s5  }
 0x16d PF: > { %p740_p1 = scmp.ge.s32.totalorder %s1146_s6, 2  ;;  %s536_s7 = sand.u32 1, %s1094_s18  }
 0x16e   : > { %s537_s10 = scalar_lea.sflag [#allocation5], %s536_s7 }
 0x16f   : > { %p736_p4 = pnand %p740_p1, %p1368_p6 }
 0x171   : > { %p737_p12 = pneg %p736_p4 }
 0x173   : > { %1089 = dma.done.wait (%p737_p12), %s537_s10, 256  }
 0x174   : > { %1091 = vsyncadd (%p737_p12), %s537_s10, 4294967040  ;;  %s27_s6 = sadd.s32 1, %s1146_s6   ;;  %s1576_s21 = sld [smem:[#allocation26_spill]] }
 0x175   : > { %p1481_p5 = scmp.ge.s32.totalorder %s27_s6, 6   ;;  %s1577_s23 = sld [smem:[#allocation17_spill]] }
 0x176   : > { %s1578_s26 = sld [smem:[#allocation24_spill]]  ;;  %s1584_s18 = smov %s1098_s19 }
 0x177   : > { %s1579_s16 = sld [smem:[#allocation18_spill]]  ;;  %s1585_s19 = smov %s1102_s20 }
 0x178   : > { %s1580_s29 = sld [smem:[#allocation25_spill]]  ;;  %s1590_s24 = smov %s1122_s25 }
 0x179   : > { %s1581_s27 = sld [smem:[#allocation21_spill]]  ;;  %s1593_s28 = smov %s1142_s30 }
 0x17a   : > { %s1582_s11 = sld [smem:[#allocation22_spill]]  ;;  %s1586_s20 = smov %s1576_s21 }
 0x17b   : > { %s1583_s1 = sld [smem:[#allocation23_spill]]  ;;  %s1587_s21 = smov %s1110_s22 }
 0x17c   : > { %s1588_s22 = smov %s1577_s23  ;;  %s1589_s23 = smov %s1578_s26 }
 0x17d   : > { %s1591_s25 = smov %s1579_s16  ;;  %26 = sbr.rel (!%p1481_p5) target bundleno = 20 (0x14), region = 133 }
 0x17e   : > { %s1592_s26 = smov %s1580_s29 }
 0x180   : > { %s1594_s29 = smov %s1582_s11 }
 0x181   : > { %s1595_s30 = smov %s1583_s1 }
 0x182   :  { %543 = vsyncpa [#allocation4], 1 }
 0x183   :  { %545 = vsyncpa [#allocation4 + $0x1], 1 }
 0x184   :  { %546 = vsyncpa [#allocation7], 1 }
 0x185   :  { %548 = vsyncpa [#allocation7 + $0x1], 1 }
 0x186   :  { %549 = vsyncpa [#allocation10], 1 }
 0x187   :  { %551 = vsyncpa [#allocation10 + $0x1], 1 }
 0x188   :  { %552 = vsyncpa [#allocation5], 1 }
 0x189   :  { %554 = vsyncpa [#allocation5 + $0x1], 1 }

</bundles_post_ra>
